<compile_context>
chip_gen: v7x
topology: tpu7x:2x2x1
jax: 0.10.0
libtpu: 0.0.40
codegen_flags: <defaults>
</compile_context>

<pallas_src>
import jax
import jax.numpy as jnp
from jax import lax
from jax.experimental import pallas as pl
from jax.experimental.pallas import tpu as pltpu


def _nll_picked_sum_kernel(x_ref, t_ref, out_ref, acc_ref):
    """Accumulate sum_i x[i, target[i]] across grid steps; finalize to SMEM scalar."""
    step = pl.program_id(0)

    @pl.when(step == 0)
    def _init():
        acc_ref[...] = jnp.zeros_like(acc_ref)

    x = x_ref[...].astype(jnp.float32)     # (TM, C): upcast per tile, accumulate in f32
    tgt = t_ref[...]                       # (TM, 1) int32; padded tail rows hold -1
    tm, c = x.shape

    # one-hot pick via lane-iota compare (VPU); padded targets (-1) match no lane.
    col = lax.broadcasted_iota(jnp.int32, (tm, c), 1)
    picked = jnp.where(col == tgt, x, 0.0)             # (TM, C)

    # Fold TM rows into the (8, C) accumulator with plain VALU adds; the reshape
    # is layout-preserving (rows already live in 8-sublane groups).  The
    # cross-lane/sublane reduction is deferred to the finalize step below.
    acc_ref[...] += jnp.sum(picked.reshape(tm // 8, 8, c), axis=0)

    @pl.when(step == pl.num_programs(0) - 1)
    def _finalize():
        out_ref[0, 0] = jnp.sum(acc_ref[...])


def _pick_block_rows(n, c, itemsize, *, target_tile_bytes=4 * 1024 * 1024,
                     max_rows=4096):
    """Rows per tile: multiple of 8, ~4 MiB per tile (x2 for double-buffering),
    sized conservatively so it fits default scoped VMEM on v5e/v6e/v7x."""
    rows = target_tile_bytes // max(1, c * itemsize)
    rows = max(8, min(int(rows), max_rows))
    rows = (rows // 8) * 8
    n_ceil8 = ((n + 7) // 8) * 8
    return max(8, min(rows, n_ceil8))


def elbo_pallas(inputs, target, kl, beta, *, train_size, block_rows=None):
    """inputs: (N, C) log-probs (any float dtype); target: (N,) int class ids."""
    n, c = inputs.shape
    if block_rows is None:
        block_rows = _pick_block_rows(n, c, inputs.dtype.itemsize)
    tm = max(8, (min(block_rows, ((n + 7) // 8) * 8) // 8) * 8)

    n_pad = pl.cdiv(n, tm) * tm
    pad = n_pad - n

    x = inputs                                    # native dtype; no wrapper f32 cast
    t = target.astype(jnp.int32).reshape(n, 1)
    if pad:
        x = jnp.pad(x, ((0, pad), (0, 0)))
        t = jnp.pad(t, ((0, pad), (0, 0)), constant_values=-1)  # -1 -> contributes 0

    picked_sum = pl.pallas_call(
        _nll_picked_sum_kernel,
        out_shape=jax.ShapeDtypeStruct((1, 1), jnp.float32),
        grid_spec=pltpu.PrefetchScalarGridSpec(
            num_scalar_prefetch=0,
            grid=(n_pad // tm,),
            in_specs=[
                pl.BlockSpec((tm, c), lambda i: (i, 0)),   # (TM, C) log-prob tile
                pl.BlockSpec((tm, 1), lambda i: (i, 0)),   # (TM, 1) target tile
            ],
            out_specs=pl.BlockSpec(memory_space=pltpu.MemorySpace.SMEM),
            scratch_shapes=[pltpu.VMEM((8, c), jnp.float32)],
        ),
        compiler_params=pltpu.CompilerParams(
            dimension_semantics=("arbitrary",)),   # sequential reduction over N tiles
    )(x, t)[0, 0]

    # Scalar fixup outside the kernel (single fused XLA scalar op).
    nll_mean = -picked_sum / jnp.float32(n)
    return (nll_mean * jnp.float32(train_size)
            + jnp.asarray(beta, jnp.float32) * jnp.asarray(kl, jnp.float32))


def elbo_reference(inputs, target, kl, beta, *, train_size):
    n = inputs.shape[0]
    picked = inputs.astype(jnp.float32)[jnp.arange(n), target]
    nll_mean = -jnp.mean(picked)
    return nll_mean * jnp.float32(train_size) + jnp.float32(beta) * jnp.float32(kl)


if __name__ == "__main__":
    key = jax.random.PRNGKey(0)
    k1, k2, k3 = jax.random.split(key, 3)

    N, C = 20, 16            # small shapes; N deliberately NOT a multiple of 8
    train_size = 1000

    logits = jax.random.normal(k1, (N, C), dtype=jnp.float32)
    log_probs = jax.nn.log_softmax(logits, axis=-1)     # nll_loss expects log-probs
    target = jax.random.randint(k2, (N,), 0, C, dtype=jnp.int32)
    kl = jax.random.uniform(k3, (), dtype=jnp.float32) * 5.0
    beta = jnp.float32(0.1)

    ref = elbo_reference(log_probs, target, kl, beta, train_size=train_size)

    # Multi-step grid path (TM=8 -> 3 grid steps, incl. a padded tail tile).
    out_tiled = elbo_pallas(log_probs, target, kl, beta,
                            train_size=train_size, block_rows=8)
    out_tiled = jax.block_until_ready(out_tiled)
    assert jnp.allclose(out_tiled, ref, rtol=1e-5, atol=1e-4), (out_tiled, ref)

    # Auto-sized tile path (single grid step at this tiny N).
    out_auto = elbo_pallas(log_probs, target, kl, beta, train_size=train_size)
    out_auto = jax.block_until_ready(out_auto)
    assert jnp.allclose(out_auto, ref, rtol=1e-5, atol=1e-4), (out_auto, ref)

    print("KERNEL_OK")
</pallas_src>

<mosaic_0001>
module attributes {stable_mosaic.version = 11 : i64} {
  func.func @_nll_picked_sum_kernel(%arg0: i32, %arg1: memref<8x16xf32, #tpu.memory_space<vmem>>, %arg2: memref<8x1xi32, #tpu.memory_space<vmem>>, %arg3: memref<1x1xf32, #tpu.memory_space<smem>>, %arg4: memref<8x16xf32, #tpu.memory_space<vmem>>) attributes {dimension_semantics = [#tpu.dimension_semantics<arbitrary>], iteration_bounds = array<i64: 3>, scalar_prefetch = 0 : i64, scratch_operands = 1 : i64, tpu.core_type = #tpu.core_type<tc>, window_params = [{transform_indices = @transform_0, window_bounds = array<i64: 8, 16>}, {transform_indices = @transform_1, window_bounds = array<i64: 8, 1>}, {transform_indices = @transform_2, window_bounds = array<i64: 1, 1>}]} {
    %c0_i32 = arith.constant 0 : i32
    %0 = arith.cmpi eq, %arg0, %c0_i32 : i32
    %1 = arith.extui %0 : i1 to i32
    %c0_i32_0 = arith.constant 0 : i32
    %2 = arith.cmpi ne, %1, %c0_i32_0 : i32
    scf.if %2 {
      %cst_10 = arith.constant 0.000000e+00 : f32
      %18 = vector.broadcast %cst_10 : f32 to vector<8x16xf32>
      %c0_11 = arith.constant 0 : index
      %c0_12 = arith.constant 0 : index
      %19 = vector.load %arg4[%c0_11, %c0_12] : memref<8x16xf32, #tpu.memory_space<vmem>>, vector<8x16xf32>
      tpu.vector_store %arg4[%c0_11, %c0_12], %18 {strides = array<i32>} : memref<8x16xf32, #tpu.memory_space<vmem>>, vector<8x16xf32>,
    } else {
    }
    %c0 = arith.constant 0 : index
    %c0_1 = arith.constant 0 : index
    %3 = vector.load %arg1[%c0, %c0_1] : memref<8x16xf32, #tpu.memory_space<vmem>>, vector<8x16xf32>
    %c0_2 = arith.constant 0 : index
    %c0_3 = arith.constant 0 : index
    %4 = vector.load %arg2[%c0_2, %c0_3] : memref<8x1xi32, #tpu.memory_space<vmem>>, vector<8x1xi32>
    %5 = tpu.iota {dimensions = array<i32: 1>} : vector<8x16xi32>
    %6 = vector.broadcast %4 : vector<8x1xi32> to vector<8x16xi32>
    %7 = arith.cmpi eq, %5, %6 : vector<8x16xi32>
    %cst = arith.constant 0.000000e+00 : f32
    %8 = vector.broadcast %cst : f32 to vector<8x16xf32>
    %9 = arith.select %7, %3, %8 : vector<8x16xi1>, vector<8x16xf32>
    %c0_4 = arith.constant 0 : index
    %c0_5 = arith.constant 0 : index
    %10 = vector.load %arg4[%c0_4, %c0_5] : memref<8x16xf32, #tpu.memory_space<vmem>>, vector<8x16xf32>
    %11 = vector.shape_cast %9 : vector<8x16xf32> to vector<1x8x16xf32>
    %cst_6 = arith.constant dense<0.000000e+00> : vector<8x16xf32>
    %12 = vector.multi_reduction <add>, %11, %cst_6 [0] : vector<1x8x16xf32> to vector<8x16xf32>
    %13 = arith.addf %10, %12 : vector<8x16xf32>
    %c0_7 = arith.constant 0 : index
    %c0_8 = arith.constant 0 : index
    %14 = vector.load %arg4[%c0_7, %c0_8] : memref<8x16xf32, #tpu.memory_space<vmem>>, vector<8x16xf32>
    tpu.vector_store %arg4[%c0_7, %c0_8], %13 {strides = array<i32>} : memref<8x16xf32, #tpu.memory_space<vmem>>, vector<8x16xf32>,
    %c2_i32 = arith.constant 2 : i32
    %15 = arith.cmpi eq, %arg0, %c2_i32 : i32
    %16 = arith.extui %15 : i1 to i32
    %c0_i32_9 = arith.constant 0 : i32
    %17 = arith.cmpi ne, %16, %c0_i32_9 : i32
    scf.if %17 {
      %c0_10 = arith.constant 0 : index
      %c0_11 = arith.constant 0 : index
      %18 = vector.load %arg4[%c0_10, %c0_11] : memref<8x16xf32, #tpu.memory_space<vmem>>, vector<8x16xf32>
      %19 = vector.shape_cast %18 : vector<8x16xf32> to vector<1x8x16xf32>
      %cst_12 = arith.constant dense<0.000000e+00> : vector<1xf32>
      %20 = vector.multi_reduction <add>, %19, %cst_12 [1, 2] : vector<1x8x16xf32> to vector<1xf32>
      %21 = vector.shape_cast %20 : vector<1xf32> to vector<1x1x1xf32>
      %22 = vector.extract %21[0, 0, 0] : f32 from vector<1x1x1xf32>
      %c0_13 = arith.constant 0 : index
      %c0_14 = arith.constant 0 : index
      %23 = memref.load %arg3[%c0_13, %c0_14] : memref<1x1xf32, #tpu.memory_space<smem>>
      memref.store %22, %arg3[%c0_13, %c0_14] : memref<1x1xf32, #tpu.memory_space<smem>>
    } else {
    }
    return
  }
  func.func @transform_0(%arg0: i32) -> (i32, i32) {
    %c0_i32 = arith.constant 0 : i32
    %c0_i32_0 = arith.constant 0 : i32
    return %arg0, %c0_i32 : i32, i32
  }
  func.func @transform_1(%arg0: i32) -> (i32, i32) {
    %c0_i32 = arith.constant 0 : i32
    %c0_i32_0 = arith.constant 0 : i32
    return %arg0, %c0_i32 : i32, i32
  }
  func.func @transform_2(%arg0: i32) -> (i32, i32) {
    %c0_i32 = arith.constant 0 : i32
    %c0_i32_0 = arith.constant 0 : i32
    %c0_i32_1 = arith.constant 0 : i32
    return %c0_i32, %c0_i32_0 : i32, i32
  }
}

</mosaic_0001>

<bundles_post_ra>
// kernel: tpu_custom_call.1
= control target key start
LH: loop header
LB: loop body
LE: loop exit
PB: predicated region body
PF: predicated region fallthrough
CT: control target
= control target key end

     0   :  { %7 = vsyncpa [#allocation4], 0  ;;  %s312_s9 = smov 0   ;;  %s348_s0 = inlined_call_operand.vmem [shape: f32[24,16], index: 0, kind: input, shape index: {}]   ;;  %s349_s1 = inlined_call_operand.vmem [shape: s32[24,1], index: 1, kind: input, shape index: {}]   ;;  %s350_s2 = inlined_call_operand.hbm [shape: f32[1,1], index: 2, kind: output, shape index: {}]  }
   0x1 LB: > { %s318_s10 = sadd.s32 4294967295, %s292_s9   ;;  %p241_p0 = scmp.ge.s32.totalorder %s292_s9, 1  ;;  %s292_s9 = sphi %s312_s9, %s13_s9  }
   0x2   : > { %p116_p1 = scmp.lt.s32.totalorder %s292_s9, 4 }
   0x4   : > { %p117_p2 = pnand %p241_p0, %p116_p1 }
   0x5   : > { %p136_p3 = scmp.lt.s32.totalorder (!%p117_p2), %s318_s10, 2  ;;  %p244_p4 = scmp.ne.s32.totalorder (!%p117_p2), %s318_s10, 0 }
   0x6   : > { %120 = sbr.rel (%p117_p2) target bundleno = 384 (0x180), region = 28 }
   0xd   : > { %s137_s11 = scalar_select %p136_p3, %s318_s10, 2 }
   0xe   : > { %147 = sbr.rel (%p244_p4) target bundleno = 21 (0x15), region = 32  ;;  %vm148_vm0 = vcmask (!%p244_p4), 130048   ;;  %v294_v0 = vmov (!%p244_p4), 0.0  }
   0xf   : > { %s242_s12 = sshll.u32 %s137_s11, 3  ;;  %149 = vst.msk [vmem:[#allocation2] sm:$0xff] (!%p244_p4), %vm148_vm0, %v294_v0 }
  0x10   : > { %s139_s15 = scalar_lea.vmem %s348_s0, %s242_s12  ;;  %s143_s18 = scalar_lea.vmem %s349_s1, %s242_s12 }
  0x15 PF: > { %v151_v1 = vld [vmem:[%s143_s18] sm:$0xff]  ;;  %v295_v2 = vmov 0   ;;  %v152_v3 = vlaneseq  ;;  %vm162_vm2 = vcmask 130048   ;;  %p245_p5 = scmp.ne.s32.totalorder %s318_s10, 2 }
  0x16   : > { %269 = vset.pattern.permute.xlu0 %v295_v2  ;;  %v150_v5 = vld [vmem:[%s139_s15] sm:$0xff] }
  0x17   : > { %155 = vperm.xlu0 %269, %v151_v1   ;;  %v153_v4 = vand.u32 127, %v152_v3  ;;  %v159_v6 = vld [vmem:[#allocation2] sm:$0xff] }
  0x95   : > { %167 = sbr.rel (%p245_p5) target bundleno = 369 (0x171), region = 36 }
  0x96   : > { %v156_v7 = vpop.permute.xlu0 %155 }
  0x97   : > { %vm157_vm1 = vcmp.eq.s32.totalorder %v153_v4, %v156_v7 }
  0x98   : > { %v158_v8 = vsel %vm157_vm1, %v150_v5, 0.0 }
  0x99   : > { %v161_v9 = vadd.f32 %v159_v6, %v158_v8 }
  0x9b   : > { %163 = vst.msk [vmem:[#allocation2] sm:$0xff] %vm162_vm2, %v161_v9 }
  0xa2   : > { %v168_v10 = vld [vmem:[#allocation2] sm:$0xff] }
  0xa3   : > { %v169_v11 = vsel %vm162_vm2, %v168_v10, 0.0 }
  0xa4   : > { %170 = vadd.xlane.f32.xlu0 %v169_v11 }
 0x131   : > { %v171_v12 = vpop.xlane.xlu0 %170 }
 0x132   : > { %v172_v13 = vrot.slane %v171_v12, 4 }
 0x134   : > { %v173_v14 = vadd.f32 %v172_v13, %v171_v12 }
 0x136   : > { %v174_v15 = vrot.slane %v173_v14, 2 }
 0x138   : > { %v175_v16 = vadd.f32 %v174_v15, %v173_v14 }
 0x13a   : > { %v176_v17 = vrot.slane %v175_v16, 1 }
 0x13c   : > { %v177_v18 = vadd.f32 %v176_v17, %v175_v16 }
 0x13e   : > { %250 = vpush %v177_v18 }
 0x16f   : > { %s251_s19 = spop %250 }
 0x170   : > { %180 = sst [smem:[#allocation3]] %s251_s19 }
 0x171 PF: > { %p256_p6 = scmp.eq.s32.totalorder %s318_s10, 2  ;;  %s270_s22 = scalar_lea.hbm %s350_s2, 16 }
 0x172   : > { %p271_p7 = scmp.ne.s32.totalorder %s350_s2, %s270_s22  ;;  %p276_p10 = scmp.lt.u32.totalorder %s270_s22, %s350_s2 }
 0x174   : > { %p272_p8 = pnand %p271_p7, %p256_p6 }
 0x176   : > { %p273_p9 = pneg %p272_p8 }
 0x178   : > { %p278_p11 = pnand %p276_p10, %p273_p9 }
 0x17a   : > { %281 = shalt.err (!%p278_p11)
}
 0x17b   : > { %s296_s27 = smov [#allocation3]  }
 0x17c   : > { %253 = dma.smem_to_hbm (%p256_p6), %s296_s27, 16, %s350_s2, [#allocation4]  }
 0x17d   : > { %287 = dma.done.wait (%p256_p6), [#allocation4], 16  }
 0x17e   : > { %289 = vsyncadd (%p256_p6), [#allocation4], 4294967280 }
 0x17f   : > { %194 = sfence }
 0x180 PF: > { %s13_s9 = sadd.s32 1, %s292_s9  }
 0x181   : > { %p10_p12 = scmp.ge.s32.totalorder %s13_s9, 5  }
 0x183   :  { %12 = sbr.rel (!%p10_p12) target bundleno = 1 (0x1), region = 67 }
 0x18a   :  { %200 = vsyncpa [#allocation4], 1 }
 0x18b   :  { %202 = vsyncpa [#allocation4 + $0x1], 1 }

</bundles_post_ra>
